<compile_context>
chip_gen: v7x
topology: tpu7x:2x2x1
jax: 0.10.0
libtpu: 0.0.40
codegen_flags: <defaults>
</compile_context>

<pallas_src>
import math
import functools

import jax
import jax.numpy as jnp
from jax.experimental import pallas as pl
from jax.experimental.pallas import tpu as pltpu


# -----------------------------------------------------------------------------
# Glue: sinusoidal positional-encoding table (matches the PyTorch __init__).
# -----------------------------------------------------------------------------
def make_positional_encoding(seq_len: int, d_model: int) -> jnp.ndarray:
    position = jnp.arange(seq_len, dtype=jnp.float32)[:, None]                   # (S, 1)
    div_term = jnp.exp(
        jnp.arange(0, d_model, 2, dtype=jnp.float32) * (-math.log(10000.0) / d_model)
    )                                                                             # (D/2,)
    pe = jnp.zeros((seq_len, d_model), dtype=jnp.float32)
    pe = pe.at[:, 0::2].set(jnp.sin(position * div_term))
    pe = pe.at[:, 1::2].set(jnp.cos(position * div_term))
    return pe                                                                     # (S, D)


# -----------------------------------------------------------------------------
# Kernels — x/out refs are (TB, TR, C) tiles, pe ref is (TR, C).
# -----------------------------------------------------------------------------
def _pe_add_kernel(x_ref, pe_ref, o_ref):
    # Eval / p == 0: out = x + pe
    y = x_ref[...].astype(jnp.float32) + pe_ref[...].astype(jnp.float32)[None, :, :]
    o_ref[...] = y.astype(o_ref.dtype)


def _pe_add_dropout_mask_kernel(x_ref, pe_ref, m_ref, o_ref, *, scale: float):
    # Portable dropout: mask holds {0, 1} in x.dtype; 1/(1-p) is a constant here.
    y = x_ref[...].astype(jnp.float32) + pe_ref[...].astype(jnp.float32)[None, :, :]
    y = y * (m_ref[...].astype(jnp.float32) * jnp.float32(scale))
    o_ref[...] = y.astype(o_ref.dtype)


def _pe_add_dropout_prng_kernel(seed_ref, x_ref, pe_ref, o_ref, *,
                                threshold: int, scale: float):
    # TPU-only dropout: hardware PRNG, no extra HBM stream.
    si = pl.program_id(0)
    bi = pl.program_id(1)
    nb = pl.num_programs(1)
    # Fold (seed, row-tile, batch-tile) into ONE scalar so seeding works even on
    # backends whose prng_seed takes a single argument; streams stay distinct.
    pltpu.prng_seed(seed_ref[0] + si * nb + bi)
    bits = pltpu.prng_random_bits(x_ref.shape)
    if bits.dtype != jnp.uint32:
        bits = pltpu.bitcast(bits, jnp.uint32)
    keep = (bits >= jnp.uint32(threshold)).astype(jnp.float32) * jnp.float32(scale)
    y = x_ref[...].astype(jnp.float32) + pe_ref[...].astype(jnp.float32)[None, :, :]
    o_ref[...] = (y * keep).astype(o_ref.dtype)


# -----------------------------------------------------------------------------
# Layout / tiling choice
# -----------------------------------------------------------------------------
def _choose_layout(B: int, S: int, D: int, itemsize: int, target_block_bytes: int):
    """Flatten (S, D) -> (R, C) with C a multiple of 128 (padding if needed) and
    pick (TB, TR) so one x/out block is ~target_block_bytes and the grid has at
    least 2 steps whenever possible (feeds both v7x TensorCores)."""
    N = S * D
    Npad = ((N + 127) // 128) * 128           # pad instead of masked partial stores
    C = 128
    for cand in (2048, 1024, 512, 256, 128):
        if Npad % cand == 0:
            C = cand
            break
    R = Npad // C
    per_batch_bytes = R * C * itemsize

    if per_batch_bytes >= target_block_bytes:
        TB = 1
        rows_cap = max(8, (target_block_bytes // (C * itemsize)) // 8 * 8)
        TR = R if R <= rows_cap else rows_cap
    else:
        # Small per-batch slab: block over batch too so DMAs stay near target.
        TR = R
        TB = max(1, min(B, target_block_bytes // max(per_batch_bytes, 1)))

    # v7x has 2 TensorCores sharded over the "parallel" grid axes: make sure the
    # grid has >= 2 steps when the problem allows it.
    def total_steps(tr, tb):
        return (-(-R // tr)) * (-(-B // tb))

    if total_steps(TR, TB) < 2:
        if B >= 2:
            TB = (B + 1) // 2
        elif R > 8:
            tr_half = ((-(-R // 2) + 7) // 8) * 8   # half the rows, multiple of 8
            if tr_half < R:
                TR = tr_half
    return N, Npad, R, C, TR, TB


# -----------------------------------------------------------------------------
# Wrapper: forward pass of PositionalEnconding
# -----------------------------------------------------------------------------
def positional_encoding_forward(x, pe_full, *, dropout: float, training: bool,
                                seed: int = 0, use_hw_prng=None):
    """x: (B, S, D); pe_full: (seq_len, D) with seq_len >= S."""
    B, S, D = x.shape
    pe = pe_full[:S, :]                               # pe[:, :x.shape[1], :]

    p = float(dropout) if training else 0.0           # nn.Dropout is identity in eval
    if p >= 1.0:
        # nn.Dropout(p=1.0) zeroes everything in training mode.
        return jnp.zeros_like(x)

    if use_hw_prng is None:
        use_hw_prng = jax.default_backend() == "tpu"
    needs_mask_stream = (p > 0.0) and not use_hw_prng

    itemsize = jnp.dtype(x.dtype).itemsize
    # ~4 MiB blocks amortize per-step overhead; 3 MiB when the portable dropout
    # mask adds a third big HBM stream (keeps 2x-buffered working set < 32 MiB).
    target_block_bytes = (3 << 20) if needs_mask_stream else (4 << 20)
    N, Npad, R, C, TR, TB = _choose_layout(B, S, D, itemsize, target_block_bytes)

    # Lane-dense flatten (+ zero padding instead of masked partial stores).
    x2 = x.reshape(B, N)
    pe1 = pe.reshape(N)
    if Npad != N:
        x2 = jnp.pad(x2, ((0, 0), (0, Npad - N)))
        pe1 = jnp.pad(pe1, (0, Npad - N))
    x3 = x2.reshape(B, R, C)
    pe2 = pe1.reshape(R, C).astype(x.dtype)           # PE stream in x.dtype; upcast in-kernel

    grid = (pl.cdiv(R, TR), pl.cdiv(B, TB))           # inner axis = batch -> PE tile resident
    xo_spec = pl.BlockSpec((TB, TR, C), lambda si, bi, *_: (bi, si, 0))
    pe_spec = pl.BlockSpec((TR, C), lambda si, bi, *_: (si, 0))
    cparams = pltpu.CompilerParams(
        dimension_semantics=("parallel", "parallel"),  # lets v7x shard over both TCs
        vmem_limit_bytes=32 * 1024 * 1024,             # explicit: v5e default is 16 MiB
    )
    out_shape = jax.ShapeDtypeStruct((B, R, C), x.dtype)

    io_bytes = 2 * B * N * itemsize + N * itemsize
    if needs_mask_stream:
        io_bytes += B * N * itemsize
    cost = pl.CostEstimate(flops=2 * B * N, transcendentals=0, bytes_accessed=io_bytes)

    if p == 0.0:
        out = pl.pallas_call(
            _pe_add_kernel,
            out_shape=out_shape,
            grid_spec=pltpu.PrefetchScalarGridSpec(
                num_scalar_prefetch=0, grid=grid,
                in_specs=[xo_spec, pe_spec], out_specs=xo_spec),
            compiler_params=cparams, cost_estimate=cost,
        )(x3, pe2)
    elif use_hw_prng:
        # Dropout mask generated in-kernel by the TPU hardware PRNG.
        threshold = min(int(p * 4294967296.0), 4294967295)   # p * 2^32, clamped
        kernel = functools.partial(_pe_add_dropout_prng_kernel,
                                   threshold=threshold, scale=1.0 / (1.0 - p))
        out = pl.pallas_call(
            kernel,
            out_shape=out_shape,
            grid_spec=pltpu.PrefetchScalarGridSpec(
                num_scalar_prefetch=1,                # seed lands in SMEM
                grid=grid,
                in_specs=[xo_spec, pe_spec], out_specs=xo_spec),
            compiler_params=cparams, cost_estimate=cost,
        )(jnp.asarray([seed], dtype=jnp.int32), x3, pe2)
    else:
        # Portable path (CPU / interpret mode has no pltpu PRNG lowering):
        # {0,1} keep-mask in x.dtype; scale is a compile-time constant in-kernel.
        keep = jax.random.bernoulli(jax.random.PRNGKey(seed), 1.0 - p, (B, R, C))
        mask = keep.astype(x.dtype)
        kernel = functools.partial(_pe_add_dropout_mask_kernel, scale=1.0 / (1.0 - p))
        out = pl.pallas_call(
            kernel,
            out_shape=out_shape,
            grid_spec=pltpu.PrefetchScalarGridSpec(
                num_scalar_prefetch=0, grid=grid,
                in_specs=[xo_spec, pe_spec, xo_spec], out_specs=xo_spec),
            compiler_params=cparams, cost_estimate=cost,
        )(x3, pe2, mask)

    out = out.reshape(B, Npad)
    if Npad != N:
        out = out[:, :N]
    return out.reshape(B, S, D)


# -----------------------------------------------------------------------------
# Demo / self-check
# -----------------------------------------------------------------------------
if __name__ == "__main__":
    d_model, seq_len, dropout = 32, 8, 0.1
    batch = 2

    key = jax.random.PRNGKey(0)
    x = jax.random.normal(key, (batch, seq_len, d_model), dtype=jnp.float32)
    pe = make_positional_encoding(seq_len, d_model)

    # Eval mode (dropout = identity): exact check against x + pe.
    out_eval = jax.block_until_ready(
        positional_encoding_forward(x, pe, dropout=dropout, training=False))
    ref = x + pe[None, :, :]
    assert out_eval.shape == x.shape and out_eval.dtype == x.dtype
    assert jnp.allclose(out_eval, ref, atol=1e-6, rtol=1e-6)

    # Training mode: inverted dropout. Every output element must be either 0
    # (dropped) or (x + pe) / (1 - p) (kept).
    # TODO(synk): the dropout mask cannot bit-match torch's RNG stream.
    out_train = jax.block_until_ready(
        positional_encoding_forward(x, pe, dropout=dropout, training=True, seed=0))
    assert out_train.shape == x.shape and out_train.dtype == x.dtype
    scaled = ref / (1.0 - dropout)
    ok = jnp.isclose(out_train, 0.0, atol=1e-6) | jnp.isclose(
        out_train, scaled, atol=1e-5, rtol=1e-5)
    assert bool(jnp.all(ok))

    # Shape where S*D is NOT a multiple of 128 -> exercises the padding path
    # (lane-dense stores instead of masked partial stores).
    d2, s2 = 24, 5
    x2 = jax.random.normal(jax.random.PRNGKey(1), (batch, s2, d2), dtype=jnp.float32)
    pe2 = make_positional_encoding(s2, d2)
    out2 = jax.block_until_ready(
        positional_encoding_forward(x2, pe2, dropout=dropout, training=False))
    assert out2.shape == x2.shape
    assert jnp.allclose(out2, x2 + pe2[None, :, :], atol=1e-6, rtol=1e-6)

    print("KERNEL_OK")
</pallas_src>

<mosaic_0001>
module attributes {stable_mosaic.version = 11 : i64} {
  func.func @_pe_add_kernel(%arg0: i32, %arg1: i32, %arg2: memref<1x1x256xf32, #tpu.memory_space<vmem>>, %arg3: memref<1x256xf32, #tpu.memory_space<vmem>>, %arg4: memref<1x1x256xf32, #tpu.memory_space<vmem>>) attributes {dimension_semantics = [#tpu.dimension_semantics<parallel>, #tpu.dimension_semantics<parallel>], iteration_bounds = array<i64: 1, 2>, scalar_prefetch = 0 : i64, scratch_operands = 0 : i64, tpu.core_type = #tpu.core_type<tc>, window_params = [{transform_indices = @transform_0, window_bounds = array<i64: 1, 1, 256>}, {transform_indices = @transform_1, window_bounds = array<i64: 1, 256>}, {transform_indices = @transform_2, window_bounds = array<i64: 1, 1, 256>}]} {
    %c0 = arith.constant 0 : index
    %c0_0 = arith.constant 0 : index
    %c0_1 = arith.constant 0 : index
    %0 = vector.load %arg2[%c0, %c0_0, %c0_1] : memref<1x1x256xf32, #tpu.memory_space<vmem>>, vector<1x1x256xf32>
    %c0_2 = arith.constant 0 : index
    %c0_3 = arith.constant 0 : index
    %1 = vector.load %arg3[%c0_2, %c0_3] : memref<1x256xf32, #tpu.memory_space<vmem>>, vector<1x256xf32>
    %2 = vector.shape_cast %1 : vector<1x256xf32> to vector<1x1x256xf32>
    %3 = arith.addf %0, %2 : vector<1x1x256xf32>
    %c0_4 = arith.constant 0 : index
    %c0_5 = arith.constant 0 : index
    %c0_6 = arith.constant 0 : index
    %4 = vector.load %arg4[%c0_4, %c0_5, %c0_6] : memref<1x1x256xf32, #tpu.memory_space<vmem>>, vector<1x1x256xf32>
    tpu.vector_store %arg4[%c0_4, %c0_5, %c0_6], %3 {strides = array<i32>} : memref<1x1x256xf32, #tpu.memory_space<vmem>>, vector<1x1x256xf32>,
    return
  }
  func.func @transform_0(%arg0: i32, %arg1: i32) -> (i32, i32, i32) {
    %c0_i32 = arith.constant 0 : i32
    %c0_i32_0 = arith.constant 0 : i32
    return %arg1, %arg0, %c0_i32 : i32, i32, i32
  }
  func.func @transform_1(%arg0: i32, %arg1: i32) -> (i32, i32) {
    %c0_i32 = arith.constant 0 : i32
    %c0_i32_0 = arith.constant 0 : i32
    return %arg0, %c0_i32 : i32, i32
  }
  func.func @transform_2(%arg0: i32, %arg1: i32) -> (i32, i32, i32) {
    %c0_i32 = arith.constant 0 : i32
    %c0_i32_0 = arith.constant 0 : i32
    return %arg1, %arg0, %c0_i32 : i32, i32, i32
  }
}

</mosaic_0001>

<bundles_post_ra>
// kernel: tpu_custom_call.1
= control target key start
LH: loop header
LB: loop body
LE: loop exit
PB: predicated region body
PF: predicated region fallthrough
CT: control target
= control target key end

     0   :  { %7 = vsyncpa [#allocation3], 0  ;;  %s705_s0 = inlined_call_operand.hbm [shape: f32[2,1,256], index: 0, kind: input, shape index: {}]   ;;  %s706_s1 = inlined_call_operand.vmem [shape: f32[1,256], index: 1, kind: input, shape index: {}]   ;;  %s707_s2 = inlined_call_operand.hbm [shape: f32[2,1,256], index: 2, kind: output, shape index: {}]  }
   0x1   :  { %9 = vsyncpa [#allocation3 + $0x1], 0 }
   0x2   :  { %10 = vsyncpa [#allocation4], 0 }
   0x3   :  { %12 = vsyncpa [#allocation4 + $0x1], 0  ;;  %s530_s9 = smov 0   ;;  %s532_s10 = smov 0  }
   0x4   :  { %s534_s11 = smov 0   ;;  %s536_s12 = smov 0  }
   0x5   :  { %s538_s13 = smov 0   ;;  %s540_s14 = smov 0  }
   0x6 LB: > { %s319_s15 = sadd.s32 4294967295, %s511_s14   ;;  %s320_s16 = sadd.s32 4294967294, %s511_s14   ;;  %s511_s14 = sphi %s540_s14, %s18_s14   ;;  %s507_s13 = sphi %s538_s13, %s723_s13   ;;  %s503_s12 = sphi %s536_s12, %s722_s12   ;;  %s499_s11 = sphi %s534_s11, %s721_s11   ;;  %s495_s10 = sphi %s532_s10, %s720_s10   ;;  %s491_s9 = sphi %s530_s9, %s719_s9  }
   0x7   : > { %s27_s17 = sadd.s32 1, %s507_s13  ;;  %s39_s18 = sadd.s32 1, %s499_s11 }
   0x8   : > { %p28_p0 = scmp.ge.s32.totalorder %s27_s17, 2  ;;  %p46_p1 = scmp.ne.s32.totalorder %s499_s11, %s495_s10 }
   0x9   : > { %p47_p2 = scmp.eq.s32.totalorder %s511_s14, 0  ;;  %p52_p3 = scmp.ne.s32.totalorder %s495_s10, %s491_s9 }
   0xa   : > { %s725_s17 = smov (%p28_p0, %s27_s17), 0  ;;  %p53_p5 = scmp.eq.s32.totalorder %s319_s15, 0 }
   0xb   : > { %p571_p4 = por %p47_p2, %p46_p1  ;;  %s34_s20 = ssub.s32 %s507_s13, %s725_s17 }
   0xc   : > { %p104_p6 = scmp.eq.s32.totalorder %s319_s15, 1  ;;  %p37_p7 = scmp.eq.s32.totalorder %s34_s20, 0 }
   0xd   : > { %p577_p8 = por %p53_p5, %p52_p3  ;;  %p110_p10 = scmp.eq.s32.totalorder %s320_s16, 1 }
   0xe   : > { %p581_p9 = por %p104_p6, %p46_p1  ;;  %p349_p13 = scmp.lt.s32.totalorder %s511_s14, 2 }
   0xf   : > { %s586_s23 = scalar_select %p37_p7, %s499_s11, %s39_s18  }
  0x10   : > { %s711_s22 = scalar_select %p581_p9, 1, 0 }
  0x11   : > { %p588_p11 = por %p110_p10, %p52_p3  ;;  %s137_s25 = sand.u32 1, %s499_s11  }
  0x12   : > { %s324_s26 = sshll.u32 %s137_s25, 1  ;;  %s335_s27 = sshll.u32 %s507_s13, 5 }
  0x13   : > { %s712_s24 = scalar_select %p588_p11, 1, 0 }
  0x14   : > { %s599_s30 = scalar_lea.hbm %s705_s0, %s335_s27  ;;  %s141_s3 = scalar_lea.vmem [#allocation2], %s324_s26 }
  0x15   : > { %s151_s4 = sshll.u32 %s141_s3, 4  ;;  %p605_p0 = pnand %p349_p13, %p571_p4  ;;  %s601_s4 = int_to_ptr.vmem [resolvable:$true] %s151_s4 }
  0x16   : > { %s138_s6 = scalar_lea.sflag [#allocation3], %s137_s25  ;;  %s399_s7 = scalar_lea.hbm %s599_s30, 32 }
  0x17   : > { %p400_p3 = scmp.ne.s32.totalorder %s599_s30, %s399_s7  ;;  %p401_p5 = pneg %p605_p0 }
  0x18   : > { %s404_s16 = scalar_lea.hbm %s705_s0, 64  ;;  %p405_p4 = scmp.lt.u32.totalorder %s599_s30, %s705_s0 }
  0x19   : > { %p402_p6 = pnand %p401_p5, %p400_p3  ;;  %p406_p10 = scmp.lt.u32.totalorder %s404_s16, %s399_s7 }
  0x1a   : > { %p408_p12 = scmp.lt.u32.totalorder %s399_s7, %s599_s30 }
  0x1b   : > { %p403_p7 = pneg %p402_p6  ;;  %p407_p13 = por %p406_p10, %p405_p4 }
  0x1d   : > { %p409_p1 = por %p408_p12, %p407_p13 }
  0x1f   : > { %p410_p2 = pnand %p409_p1, %p403_p7 }
  0x21   : > { %413 = shalt.err (!%p410_p2)
}
  0x22   : > { %s414_s20 = scalar_lea.vmem %s601_s4, 32  ;;  %s513_s25 = smov [#allocation2]  }
  0x23   : > { %p415_p3 = scmp.ne.s32.totalorder %s601_s4, %s414_s20  ;;  %s419_s26 = sshll.u32 %s513_s25, 4  ;;  %s420_s26 = int_to_ptr.vmem [resolvable:$false] %s419_s26 }
  0x24   : > { %s421_s27 = scalar_lea.vmem %s420_s26, 64  ;;  %p422_p9 = scmp.lt.s32.totalorder %s601_s4, %s420_s26 }
  0x25   : > { %p417_p6 = pnand %p415_p3, %p401_p5  ;;  %p423_p4 = scmp.lt.s32.totalorder %s421_s27, %s414_s20 }
  0x27   : > { %p418_p11 = pneg %p417_p6  ;;  %p424_p10 = por %p423_p4, %p422_p9 }
  0x29   : > { %p425_p12 = pnand %p424_p10, %p418_p11 }
  0x2b   : > { %428 = shalt.err (!%p425_p12)
}
  0x2c   : > { %344 = dma.hbm_to_vmem [thread:$0]  (!%p605_p0), %s599_s30, 32, %s601_s4, %s138_s6  }
  0x2d   : > { %p714_p1 = scmp.lt.s32.totalorder %s511_s14, 3  ;;  %p715_p2 = scmp.ge.s32.totalorder %s511_s14, 1 }
  0x2f   : > { %p157_p5 = pnand %p715_p2, %p714_p1 }
  0x30   : > { %s641_s28 = sand.u32 (!%p157_p5), 1, %s495_s10  }
  0x31   : > { %160 = sbr.rel (%p157_p5) target bundleno = 83 (0x53), region = 28  ;;  %s328_s29 = sshll.u32 (!%p157_p5), %s641_s28, 1 }
  0x32   : > { %s163_s3 = scalar_lea.sflag (!%p157_p5), [#allocation3], %s641_s28  ;;  %s166_s7 = scalar_lea.vmem (!%p157_p5), [#allocation2], %s328_s29 }
  0x38   : > { %482 = dma.done.wait (%p577_p8), %s163_s3, 32  }
  0x39   : > { %484 = vsyncadd (%p577_p8), %s163_s3, 4294967264  ;;  %v198_v0 = vlaneseq  ;;  %s190_s30 = scalar_lea.vmem [#allocation5], %s328_s29  ;;  %s336_s5 = sshll.u32 %s503_s12, 5  ;;  %v195_v1 = vld [vmem:[%s166_s7] sm:$0x3] }
  0x3a   : > { %s220_s4 = sshll.u32 %s190_s30, 4  ;;  %v196_v2 = vld [vmem:[%s706_s1] sm:$0x3]  ;;  %s658_s21 = scalar_lea.hbm %s707_s2, %s336_s5  ;;  %s653_s4 = int_to_ptr.vmem [resolvable:$true] %s220_s4 }
  0x3b   : > { %vm200_vm0 = vcmp.lt.s32.totalorder %v198_v0, 256  ;;  %v197_v3 = vadd.f32 %v196_v2, %v195_v1  ;;  %s204_s18 = scalar_lea.sflag [#allocation4], %s641_s28  ;;  %s429_s12 = scalar_lea.vmem %s653_s4, 32 }
  0x3c   : > { %p430_p8 = scmp.ne.s32.totalorder %s653_s4, %s429_s12  ;;  %p716_p9 = scmp.ne.s32.totalorder %s711_s22, 0 }
  0x3d   : > { %202 = vst.msk [vmem:[%s190_s30] sm:$0x3] %vm200_vm0, %v197_v3  ;;  %s514_s19 = smov [#allocation5]  }
  0x3e   : > { %p431_p11 = pnand %p430_p8, %p716_p9  ;;  %s433_s20 = sshll.u32 %s514_s19, 4  ;;  %s434_s20 = int_to_ptr.vmem [resolvable:$false] %s433_s20 }
  0x3f   : > { %s435_s25 = scalar_lea.vmem %s434_s20, 64  ;;  %p436_p7 = scmp.lt.s32.totalorder %s653_s4, %s434_s20 }
  0x40   : > { %p432_p0 = pneg %p431_p11  ;;  %p437_p13 = scmp.lt.s32.totalorder %s435_s25, %s429_s12 }
  0x42   : > { %p438_p3 = por %p437_p13, %p436_p7 }
  0x44   : > { %p439_p6 = pnand %p438_p3, %p432_p0 }
  0x46   : > { %442 = shalt.err (!%p439_p6)
}
  0x47   : > { %s443_s26 = scalar_lea.hbm %s658_s21, 32  ;;  %s447_s29 = scalar_lea.hbm %s707_s2, 64 }
  0x48   : > { %p444_p4 = scmp.ne.s32.totalorder %s658_s21, %s443_s26  ;;  %p448_p1 = scmp.lt.u32.totalorder %s658_s21, %s707_s2 }
  0x49   : > { %p449_p2 = scmp.lt.u32.totalorder %s447_s29, %s443_s26  ;;  %p451_p8 = scmp.lt.u32.totalorder %s443_s26, %s658_s21 }
  0x4a   : > { %p445_p10 = pnand %p444_p4, %p716_p9 }
  0x4b   : > { %p450_p5 = por %p449_p2, %p448_p1 }
  0x4c   : > { %p446_p12 = pneg %p445_p10 }
  0x4d   : > { %p452_p11 = por %p451_p8, %p450_p5 }
  0x4f   : > { %p453_p0 = pnand %p452_p11, %p446_p12 }
  0x51   : > { %456 = shalt.err (!%p453_p0)
}
  0x52   : > { %339 = dma.vmem_to_hbm [thread:$0]  (%p716_p9), %s653_s4, 32, %s658_s21, %s204_s18  }
  0x53 PF: > { %s232_s30 = sand.u32 1, %s491_s9   ;;  %p717_p7 = scmp.ne.s32.totalorder %s712_s24, 0 }
  0x54   : > { %p718_p13 = scmp.ge.s32.totalorder %s511_s14, 2  ;;  %s233_s5 = scalar_lea.sflag [#allocation4], %s232_s30 }
  0x56   : > { %p346_p3 = pnand %p718_p13, %p717_p7 }
  0x58   : > { %486 = dma.done.wait (!%p346_p3), %s233_s5, 32  }
  0x59   : > { %488 = vsyncadd (!%p346_p3), %s233_s5, 4294967264  ;;  %s18_s14 = sadd.s32 1, %s511_s14   ;;  %s719_s9 = smov %s495_s10 }
  0x5a   : > { %p15_p6 = scmp.ge.s32.totalorder %s18_s14, 4   ;;  %s720_s10 = smov %s499_s11 }
  0x5b   : > { %s721_s11 = smov %s586_s23  ;;  %s722_s12 = smov %s507_s13 }
  0x5c   : > { %s723_s13 = smov %s725_s17  ;;  %17 = sbr.rel (!%p15_p6) target bundleno = 6 (0x6), region = 76 }
  0x63   :  { %238 = vsyncpa [#allocation3], 1 }
  0x64   :  { %240 = vsyncpa [#allocation3 + $0x1], 1 }
  0x65   :  { %241 = vsyncpa [#allocation4], 1 }
  0x66   :  { %243 = vsyncpa [#allocation4 + $0x1], 1 }

</bundles_post_ra>
